<compile_context>
chip_gen: v7x
topology: tpu7x:2x2x1
jax: 0.10.0
libtpu: 0.0.40
codegen_flags: <defaults>
</compile_context>

<pallas_src>
import jax
import jax.numpy as jnp
from jax import lax
from jax.experimental import pallas as pl
from jax.experimental.pallas import tpu as pltpu


# ---------------------------------------------------------------------------
# Kernel 1: TriLinear similarity logits
# ---------------------------------------------------------------------------

def _trilinear_kernel(w_ref, q_ref, k_ref, o_ref):
    # w_ref: (3, D) rows = [w1, w2, w3]; q_ref: (BB, TQ, D); k_ref: (BB, TK, D)
    # o_ref: (BB, TQ, TK)
    q = q_ref[...]                                    # input dtype (no upcast)
    k = k_ref[...]
    w = w_ref[...].astype(k.dtype)
    w1 = w[0:1, :]                                    # (1, D)
    w2 = w[1:2, :]
    w3 = w[2:3, :]

    # Fold the query-side bias into the matmul RHS:
    #   sum_d q*(w3*k + w1) = q·(w3∘k) + q·w1
    rhs = w3 * k + w1                                 # (BB, TK, D)

    # 'bqd,bkd->bqk' — MXU consumes the RHS transposed natively, no .T needed.
    dot_logit = lax.dot_general(
        q, rhs,
        dimension_numbers=(((2,), (2,)), ((0,), (0,))),
        preferred_element_type=jnp.float32)           # (BB, TQ, TK) f32

    # Key-side bias, produced lane-major as (BB, 1, TK): 'b1d,bkd->b1k'.
    bb, d = k.shape[0], k.shape[-1]
    w2b = jnp.broadcast_to(w2, (bb, 1, d))
    k_logit = lax.dot_general(
        w2b, k,
        dimension_numbers=(((2,), (2,)), ((0,), (0,))),
        preferred_element_type=jnp.float32)           # (BB, 1, TK) f32

    o_ref[...] = (dot_logit + k_logit).astype(o_ref.dtype)


def _pick_tile(n, preferred):
    for t in preferred:
        if t <= n and n % t == 0:
            return t
    return n  # fall back to the full dim (always a legal block)


def _pick_batch_block(batch, tq, tk, d, itemsize):
    # Fuse several batches per grid step only when the per-batch tile is tiny
    # (otherwise the work is already grid-overhead free).
    if tq * tk > 128 * 128:
        return 1
    budget = 2 * 1024 * 1024  # bytes per live block (pipeline double-buffers)
    for cand in (64, 32, 16, 8, 4, 2):
        if batch % cand:
            continue
        if cand * tq * tk * 4 <= budget and cand * (tq + tk) * d * itemsize <= budget:
            return cand
    return 1


def trilinear(query, key, w1, w2, w3, *, tq=None, tk=None):
    B, Lq, D = query.shape
    Bk, Lk, Dk = key.shape
    assert B == Bk and D == Dk

    # Lane-dense output tiles: TK multiple of 128 (512 preferred), TQ multiple of 8.
    tq = tq or _pick_tile(Lq, (256, 128, 64, 32, 16, 8))
    tk = tk or _pick_tile(Lk, (512, 384, 256, 128))
    bb = _pick_batch_block(B, tq, tk, D, query.dtype.itemsize)

    # Pack the three (1, D) weights into one resident (3, D) block.
    w = jnp.concatenate([w1, w2, w3], axis=0)

    grid = (B // bb, Lq // tq, Lk // tk)
    return pl.pallas_call(
        _trilinear_kernel,
        out_shape=jax.ShapeDtypeStruct((B, Lq, Lk), jnp.float32),
        grid_spec=pltpu.PrefetchScalarGridSpec(
            num_scalar_prefetch=0,
            grid=grid,
            in_specs=[
                pl.BlockSpec((3, D), lambda b, qi, ki: (0, 0)),          # weights
                pl.BlockSpec((bb, tq, D), lambda b, qi, ki: (b, qi, 0)),  # query
                pl.BlockSpec((bb, tk, D), lambda b, qi, ki: (b, ki, 0)),  # key
            ],
            out_specs=pl.BlockSpec((bb, tq, tk), lambda b, qi, ki: (b, qi, ki)),
        ),
        compiler_params=pltpu.CompilerParams(
            dimension_semantics=("parallel", "parallel", "parallel"),
            vmem_limit_bytes=64 * 1024 * 1024),
    )(w, query, key)


# ---------------------------------------------------------------------------
# Kernel 2: dual softmax + attention / co-attention matmuls (per batch)
# ---------------------------------------------------------------------------

def _attention_kernel(logit_ref, v_ref, q_ref,
                      attn_ref, aw_ref, co_attn_ref, cw_ref):
    logit = logit_ref[0]                              # (Lq, Lk) f32
    v = v_ref[0]                                      # (Lk, Dv)
    q = q_ref[0]                                      # (Lq, D)

    # softmax over keys (torch dim=-1)
    m_row = jnp.max(logit, axis=-1, keepdims=True)
    e_row = jnp.exp(logit - m_row)
    attn_w = e_row / jnp.sum(e_row, axis=-1, keepdims=True)      # (Lq, Lk)

    # softmax over queries (torch dim=1 of (B, Lq, Lk))
    m_col = jnp.max(logit, axis=0, keepdims=True)
    e_col = jnp.exp(logit - m_col)
    kq_w = e_col / jnp.sum(e_col, axis=0, keepdims=True)         # (Lq, Lk)

    # attn = attn_weight @ value
    attn = lax.dot_general(
        attn_w.astype(v.dtype), v,
        dimension_numbers=(((1,), (0,)), ((), ())),
        preferred_element_type=jnp.float32)                       # (Lq, Dv)

    # co_weight = attn_weight @ kq_weight^T  ('qk,pk->qp', no explicit .T)
    co_w = lax.dot_general(
        attn_w, kq_w,
        dimension_numbers=(((1,), (1,)), ((), ())),
        preferred_element_type=jnp.float32)                       # (Lq, Lq)

    # co_attn = co_weight @ query
    co_attn = lax.dot_general(
        co_w.astype(q.dtype), q,
        dimension_numbers=(((1,), (0,)), ((), ())),
        preferred_element_type=jnp.float32)                       # (Lq, D)

    attn_ref[0] = attn.astype(attn_ref.dtype)
    aw_ref[0] = attn_w.astype(aw_ref.dtype)
    co_attn_ref[0] = co_attn.astype(co_attn_ref.dtype)
    cw_ref[0] = co_w.astype(cw_ref.dtype)


def attention_forward(query, key, value, w1, w2, w3):
    """Attention(sim=TriLinear)(query, key, value) with masks=None."""
    # TODO(synk): optional query_mask/key_mask masked_fill path not implemented
    # (module default is mask=None).
    # TODO(synk): flash-style streaming for very long Lq*Lk is not implemented;
    # the dim=1 softmax + co-attention need the full per-batch slab.
    B, Lq, D = query.shape
    _, Lk, Dv = value.shape

    logit = trilinear(query, key, w1, w2, w3)         # (B, Lq, Lk) f32

    outs = pl.pallas_call(
        _attention_kernel,
        out_shape=(
            jax.ShapeDtypeStruct((B, Lq, Dv), jnp.float32),   # attn
            jax.ShapeDtypeStruct((B, Lq, Lk), jnp.float32),   # attn_weight
            jax.ShapeDtypeStruct((B, Lq, D), jnp.float32),    # co_attn
            jax.ShapeDtypeStruct((B, Lq, Lq), jnp.float32),   # co_weight
        ),
        grid_spec=pltpu.PrefetchScalarGridSpec(
            num_scalar_prefetch=0,
            grid=(B,),
            in_specs=[
                pl.BlockSpec((1, Lq, Lk), lambda b: (b, 0, 0)),   # logit
                pl.BlockSpec((1, Lk, Dv), lambda b: (b, 0, 0)),   # value
                pl.BlockSpec((1, Lq, D), lambda b: (b, 0, 0)),    # query
            ],
            out_specs=[
                pl.BlockSpec((1, Lq, Dv), lambda b: (b, 0, 0)),
                pl.BlockSpec((1, Lq, Lk), lambda b: (b, 0, 0)),
                pl.BlockSpec((1, Lq, D), lambda b: (b, 0, 0)),
                pl.BlockSpec((1, Lq, Lq), lambda b: (b, 0, 0)),
            ],
        ),
        compiler_params=pltpu.CompilerParams(
            dimension_semantics=("parallel",),
            vmem_limit_bytes=64 * 1024 * 1024),
    )(logit, value, query)
    attn, attn_weight, co_attn, co_weight = outs
    return (attn, attn_weight), (co_attn, co_weight)


# ---------------------------------------------------------------------------
# Pure-JAX reference
# ---------------------------------------------------------------------------

def trilinear_ref(query, key, w1, w2, w3):
    q_logit = jnp.einsum("bqd,od->bqo", query, w1)
    k_logit = jnp.einsum("bkd,od->bko", key, w2)
    dot_logit = jnp.einsum("bqd,bkd->bqk", query, w3.reshape(1, 1, -1) * key)
    return q_logit + jnp.swapaxes(k_logit, -1, -2) + dot_logit


def attention_ref(query, key, value, w1, w2, w3):
    logit = trilinear_ref(query, key, w1, w2, w3)
    attn_weight = jax.nn.softmax(logit, axis=-1)
    attn = jnp.einsum("bqk,bkd->bqd", attn_weight, value)
    kq_weight = jax.nn.softmax(logit, axis=1)
    co_weight = jnp.einsum("bqk,bpk->bqp", attn_weight, kq_weight)
    co_attn = jnp.einsum("bqp,bpd->bqd", co_weight, query)
    return (attn, attn_weight), (co_attn, co_weight)


if __name__ == "__main__":
    B, Lq, Lk, D, Dv = 2, 8, 8, 32, 32

    root = jax.random.PRNGKey(0)
    kq, kk, kv, k1, k2, k3 = jax.random.split(root, 6)

    query = jax.random.normal(kq, (B, Lq, D), dtype=jnp.float32)
    key = jax.random.normal(kk, (B, Lk, D), dtype=jnp.float32)
    value = jax.random.normal(kv, (B, Lk, Dv), dtype=jnp.float32)

    # TriLinear params: nn.Parameter(FloatTensor(1, D)), init.normal_(w, 0, 0.02)
    w1 = 0.02 * jax.random.normal(k1, (1, D), dtype=jnp.float32)
    w2 = 0.02 * jax.random.normal(k2, (1, D), dtype=jnp.float32)
    w3 = 0.02 * jax.random.normal(k3, (1, D), dtype=jnp.float32)

    out = attention_forward(query, key, value, w1, w2, w3)
    jax.block_until_ready(out)
    (attn, attn_w), (co_attn, co_w) = out

    (r_attn, r_aw), (r_co_attn, r_cw) = attention_ref(query, key, value, w1, w2, w3)

    assert attn.shape == (B, Lq, Dv) and attn_w.shape == (B, Lq, Lk)
    assert co_attn.shape == (B, Lq, D) and co_w.shape == (B, Lq, Lq)
    for got, ref in ((attn, r_attn), (attn_w, r_aw),
                     (co_attn, r_co_attn), (co_w, r_cw)):
        assert jnp.allclose(got, ref, atol=1e-4, rtol=1e-4), "mismatch vs reference"

    print("KERNEL_OK")
</pallas_src>

<mosaic_0001>
module attributes {stable_mosaic.version = 11 : i64} {
  func.func @_trilinear_kernel(%arg0: i32, %arg1: i32, %arg2: i32, %arg3: memref<3x32xf32, #tpu.memory_space<vmem>>, %arg4: memref<2x8x32xf32, #tpu.memory_space<vmem>>, %arg5: memref<2x8x32xf32, #tpu.memory_space<vmem>>, %arg6: memref<2x8x8xf32, #tpu.memory_space<vmem>>) attributes {dimension_semantics = [#tpu.dimension_semantics<parallel>, #tpu.dimension_semantics<parallel>, #tpu.dimension_semantics<parallel>], iteration_bounds = array<i64: 1, 1, 1>, scalar_prefetch = 0 : i64, scratch_operands = 0 : i64, tpu.core_type = #tpu.core_type<tc>, window_params = [{pipeline_mode = #tpu.pipeline_mode<synchronous>, transform_indices = @transform_0, window_bounds = array<i64: 3, 32>}, {transform_indices = @transform_1, window_bounds = array<i64: 2, 8, 32>}, {transform_indices = @transform_2, window_bounds = array<i64: 2, 8, 32>}, {transform_indices = @transform_3, window_bounds = array<i64: 2, 8, 8>}]} {
    %c0 = arith.constant 0 : index
    %c0_0 = arith.constant 0 : index
    %c0_1 = arith.constant 0 : index
    %0 = vector.load %arg4[%c0, %c0_0, %c0_1] : memref<2x8x32xf32, #tpu.memory_space<vmem>>, vector<2x8x32xf32>
    %c0_2 = arith.constant 0 : index
    %c0_3 = arith.constant 0 : index
    %c0_4 = arith.constant 0 : index
    %1 = vector.load %arg5[%c0_2, %c0_3, %c0_4] : memref<2x8x32xf32, #tpu.memory_space<vmem>>, vector<2x8x32xf32>
    %c0_5 = arith.constant 0 : index
    %c0_6 = arith.constant 0 : index
    %2 = vector.load %arg3[%c0_5, %c0_6] : memref<3x32xf32, #tpu.memory_space<vmem>>, vector<3x32xf32>
    %3 = vector.extract_strided_slice %2 {offsets = [0, 0], sizes = [1, 32], strides = [1, 1]} : vector<3x32xf32> to vector<1x32xf32>
    %4 = vector.extract_strided_slice %2 {offsets = [1, 0], sizes = [1, 32], strides = [1, 1]} : vector<3x32xf32> to vector<1x32xf32>
    %5 = vector.extract_strided_slice %2 {offsets = [2, 0], sizes = [1, 32], strides = [1, 1]} : vector<3x32xf32> to vector<1x32xf32>
    %6 = vector.shape_cast %5 : vector<1x32xf32> to vector<1x1x32xf32>
    %7 = vector.broadcast %6 : vector<1x1x32xf32> to vector<2x8x32xf32>
    %8 = arith.mulf %7, %1 : vector<2x8x32xf32>
    %9 = vector.shape_cast %3 : vector<1x32xf32> to vector<1x1x32xf32>
    %10 = vector.broadcast %9 : vector<1x1x32xf32> to vector<2x8x32xf32>
    %11 = arith.addf %8, %10 : vector<2x8x32xf32>
    %cst = arith.constant dense<0.000000e+00> : vector<2x8x8xf32>
    %12 = tpu.matmul %0, %11, %cst {dimension_numbers = #tpu.dot_dimension_numbers<[2], [2], [1], [1], [0, 0, 0, 1, 1, 1], [0], [0]>} : vector<2x8x32xf32>, vector<2x8x32xf32>, vector<2x8x8xf32> -> vector<2x8x8xf32>
    %13 = vector.shape_cast %4 : vector<1x32xf32> to vector<1x1x32xf32>
    %14 = vector.broadcast %13 : vector<1x1x32xf32> to vector<2x1x32xf32>
    %cst_7 = arith.constant dense<0.000000e+00> : vector<2x1x8xf32>
    %15 = tpu.matmul %14, %1, %cst_7 {dimension_numbers = #tpu.dot_dimension_numbers<[2], [2], [1], [1], [0, 0, 0, 1, 1, 1], [0], [0]>} : vector<2x1x32xf32>, vector<2x8x32xf32>, vector<2x1x8xf32> -> vector<2x1x8xf32>
    %16 = vector.broadcast %15 : vector<2x1x8xf32> to vector<2x8x8xf32>
    %17 = arith.addf %12, %16 : vector<2x8x8xf32>
    %c0_8 = arith.constant 0 : index
    %c0_9 = arith.constant 0 : index
    %c0_10 = arith.constant 0 : index
    %18 = vector.load %arg6[%c0_8, %c0_9, %c0_10] : memref<2x8x8xf32, #tpu.memory_space<vmem>>, vector<2x8x8xf32>
    tpu.vector_store %arg6[%c0_8, %c0_9, %c0_10], %17 {strides = array<i32>} : memref<2x8x8xf32, #tpu.memory_space<vmem>>, vector<2x8x8xf32>,
    return
  }
  func.func @transform_0(%arg0: i32, %arg1: i32, %arg2: i32) -> (i32, i32) {
    %c0_i32 = arith.constant 0 : i32
    %c0_i32_0 = arith.constant 0 : i32
    %c0_i32_1 = arith.constant 0 : i32
    return %c0_i32, %c0_i32_0 : i32, i32
  }
  func.func @transform_1(%arg0: i32, %arg1: i32, %arg2: i32) -> (i32, i32, i32) {
    %c0_i32 = arith.constant 0 : i32
    %c0_i32_0 = arith.constant 0 : i32
    return %arg0, %arg1, %c0_i32 : i32, i32, i32
  }
  func.func @transform_2(%arg0: i32, %arg1: i32, %arg2: i32) -> (i32, i32, i32) {
    %c0_i32 = arith.constant 0 : i32
    %c0_i32_0 = arith.constant 0 : i32
    return %arg0, %arg2, %c0_i32 : i32, i32, i32
  }
  func.func @transform_3(%arg0: i32, %arg1: i32, %arg2: i32) -> (i32, i32, i32) {
    %c0_i32 = arith.constant 0 : i32
    return %arg0, %arg1, %arg2 : i32, i32, i32
  }
}

</mosaic_0001>

<bundles_post_ra>
// kernel: tpu_custom_call.1
= control target key start
LH: loop header
LB: loop body
LE: loop exit
PB: predicated region body
PF: predicated region fallthrough
CT: control target
= control target key end

     0   :  { %8 = vsyncpa [#allocation3], 0  ;;  %s638_s0 = inlined_call_operand.hbm [shape: f32[3,32], index: 0, kind: input, shape index: {}]   ;;  %s639_s1 = inlined_call_operand.hbm [shape: f32[2,8,32], index: 1, kind: input, shape index: {}]   ;;  %s640_s2 = inlined_call_operand.hbm [shape: f32[2,8,32], index: 2, kind: input, shape index: {}]   ;;  %s641_s3 = inlined_call_operand.hbm [shape: f32[2,8,8], index: 3, kind: output, shape index: {}]  }
   0x1   :  { %9 = vsyncpa [#allocation6], 0 }
   0x2   :  { %10 = vsyncpa [#allocation4], 0  ;;  %s541_s12 = smov [#allocation5]   ;;  %s447_s16 = scalar_lea.hbm %s639_s1, 256 }
   0x3   :  { %s26_s13 = sshll.u32 %s541_s12, 4  ;;  %p448_p0 = scmp.ne.s32.totalorder %s639_s1, %s447_s16  ;;  %s27_s13 = int_to_ptr.vmem [resolvable:$true] %s26_s13 }
   0x4   :  { %p451_p1 = scmp.lt.u32.totalorder %s447_s16, %s639_s1 }
   0x6   :  { %p453_p2 = pnand %p451_p1, %p448_p0 }
   0x8   :  { %456 = shalt.err (!%p453_p2)
}
   0x9   :  { %s457_s21 = scalar_lea.vmem %s27_s13, 256  ;;  %p462_p4 = scmp.lt.s32.totalorder %s27_s13, %s27_s13 }
   0xa   :  { %p458_p3 = scmp.ne.s32.totalorder %s27_s13, %s457_s21  ;;  %p463_p5 = scmp.lt.s32.totalorder %s457_s21, %s457_s21 }
   0xc   :  { %p464_p6 = por %p463_p5, %p462_p4 }
   0xe   :  { %p465_p7 = pnand %p464_p6, %p458_p3 }
  0x10   :  { %468 = shalt.err (!%p465_p7)
}
  0x11   :  { %s542_s22 = smov 128   ;;  %s543_s23 = smov 8  }
  0x12   :  { %32 = dma.hbm_to_vmem [thread:$0]  %s639_s1, 256, %s27_s13, [#allocation6], %s542_s22, %s542_s22, %s543_s23  }
  0x13   :  { %s544_s26 = smov [#allocation2]   ;;  %s545_s28 = smov [#allocation7]  }
  0x14   :  { %s17_s27 = sshll.u32 %s544_s26, 4  ;;  %s38_s29 = sshll.u32 %s545_s28, 4  ;;  %s18_s27 = int_to_ptr.vmem [resolvable:$true] %s17_s27  ;;  %s39_s29 = int_to_ptr.vmem [resolvable:$true] %s38_s29 }
  0x15   :  { %s469_s5 = scalar_lea.hbm %s638_s0, 64 }
  0x16   :  { %p470_p8 = scmp.ne.s32.totalorder %s638_s0, %s469_s5  ;;  %p473_p9 = scmp.lt.u32.totalorder %s469_s5, %s638_s0 }
  0x18   :  { %p475_p10 = pnand %p473_p9, %p470_p8 }
  0x1a   :  { %478 = shalt.err (!%p475_p10)
}
  0x1b   :  { %s479_s1 = scalar_lea.vmem %s18_s27, 64  ;;  %p484_p12 = scmp.lt.s32.totalorder %s18_s27, %s18_s27 }
  0x1c   :  { %p480_p11 = scmp.ne.s32.totalorder %s18_s27, %s479_s1  ;;  %p485_p13 = scmp.lt.s32.totalorder %s479_s1, %s479_s1 }
  0x1e   :  { %p486_p0 = por %p485_p13, %p484_p12 }
  0x20   :  { %p487_p1 = pnand %p486_p0, %p480_p11 }
  0x22   :  { %490 = shalt.err (!%p487_p1)
}
  0x23   :  { %20 = dma.hbm_to_vmem [thread:$0]  %s638_s0, 64, %s18_s27, [#allocation3]  }
  0x24   :  { %s491_s14 = scalar_lea.hbm %s640_s2, 256 }
  0x25   :  { %p492_p2 = scmp.ne.s32.totalorder %s640_s2, %s491_s14  ;;  %p495_p3 = scmp.lt.u32.totalorder %s491_s14, %s640_s2 }
  0x27   :  { %p497_p4 = pnand %p495_p3, %p492_p2 }
  0x29   :  { %500 = shalt.err (!%p497_p4)
}
  0x2a   :  { %s501_s19 = scalar_lea.vmem %s39_s29, 256  ;;  %p506_p6 = scmp.lt.s32.totalorder %s39_s29, %s39_s29 }
  0x2b   :  { %p502_p5 = scmp.ne.s32.totalorder %s39_s29, %s501_s19  ;;  %p507_p7 = scmp.lt.s32.totalorder %s501_s19, %s501_s19 }
  0x2d   :  { %p508_p8 = por %p507_p7, %p506_p6 }
  0x2f   :  { %p509_p9 = pnand %p508_p8, %p502_p5 }
  0x31   :  { %512 = shalt.err (!%p509_p9)
}
  0x32   :  { %44 = dma.hbm_to_vmem [thread:$0]  %s640_s2, 256, %s39_s29, [#allocation6], %s542_s22, %s542_s22, %s543_s23  }
  0x33   :  { %535 = dma.done.wait [#allocation3], 64  }
  0x34   :  { %536 = vsyncadd [#allocation3], 4294967232 }
  0x35   :  { %537 = dma.done.wait [#allocation6], 512  }
  0x36   :  { %538 = vsyncadd [#allocation6], 4294966784  ;;  %v59_v0 = vlaneseq  ;;  %v546_v1 = vmov 0.0   ;;  %vm547_vm0 = vmmov 0   ;;  %vm73_vm1 = vcmask 261120   ;;  %v56_v5 = vld [vmem:[#allocation7] sm:$0xff] }
  0x37   :  { %419 = vmatprep.subr.mxu0 %v546_v1  ;;  %424 = vmatprep.subr.mxu1 %v546_v1  ;;  %v58_v6 = vld [vmem:[#allocation2] sm:$0x7]  ;;  %v54_v15 = vld [vmem:[#allocation5] sm:$0xff]  ;;  %v55_v16 = vld [vmem:[#allocation5 + $0x8] sm:$0xff]  ;;  %s548_s2 = smov [#allocation8]   ;;  %vm382_vm2 = vcmask 64512  }
  0x38   :  { %v60_v2 = vshrl.u32 %v59_v0, 7  ;;  %421 = vmatprep.mubr.msk.f32.mxu0 %vm547_vm0, %v546_v1  ;;  %426 = vmatprep.mubr.msk.f32.mxu1 %vm547_vm0, %v546_v1  ;;  %v57_v7 = vld [vmem:[#allocation7 + $0x8] sm:$0xff]  ;;  %v72_v10 = vrot.slane %v58_v6, 1  ;;  %s390_s21 = sshll.u32 %s548_s2, 4  ;;  %s391_s21 = int_to_ptr.vmem [resolvable:$true] %s390_s21 }
  0x39   :  { %420 = vmatpush3.xpose.msk.msra.mxu0 %vm73_vm1, %v56_v5  ;;  %425 = vmatpush3.xpose.msk.msra.mxu1 %vm73_vm1, %v57_v7  ;;  %s513_s24 = scalar_lea.vmem %s391_s21, 256  ;;  %p518_p11 = scmp.lt.s32.totalorder %s391_s21, %s391_s21 }
  0x3a   :  { %v61_v3 = vsub.s32 2, %v60_v2  ;;  %v67_v4 = vsub.s32 0, %v60_v2  ;;  %429 = vmatprep.subr.mxu0 %v546_v1  ;;  %434 = vmatprep.subr.mxu1 %v546_v1  ;;  %p514_p10 = scmp.ne.s32.totalorder %s391_s21, %s513_s24  ;;  %p519_p12 = scmp.lt.s32.totalorder %s513_s24, %s513_s24 }
  0x3c   :  { %v62_v8 = vrot.slane %v58_v6, %v61_v3  ;;  %v68_v9 = vrot.slane %v58_v6, %v67_v4  ;;  %422 = vmatmul.mubr.msk.f32.vlgmr.msra.gmra.mrb[0].mxu0 %vm73_vm1, %v72_v10  ;;  %427 = vmatmul.mubr.msk.f32.vlgmr.msra.gmra.mrb[0].mxu1 %vm73_vm1, %v72_v10  ;;  %p520_p13 = por %p519_p12, %p518_p11 }
  0x3d   :  { %431 = vmatprep.mubr.msk.f32.mxu0 %vm547_vm0, %v546_v1  ;;  %436 = vmatprep.mubr.msk.f32.mxu1 %vm547_vm0, %v546_v1 }
  0x3e   :  { %v63_v11 = vmul.f32 %v62_v8, %v56_v5  ;;  %v64_v12 = vmul.f32 %v62_v8, %v57_v7  ;;  %p521_p0 = pnand %p520_p13, %p514_p10 }
  0x40   :  { %v69_v13 = vadd.f32 %v68_v9, %v63_v11  ;;  %v70_v14 = vadd.f32 %v68_v9, %v64_v12 }
  0x42   :  { %430 = vmatpush3.xpose.msk.msra.mxu0 %vm73_vm1, %v69_v13  ;;  %435 = vmatpush3.xpose.msk.msra.mxu1 %vm73_vm1, %v70_v14 }
  0x45   :  { %432 = vmatmul.mubr.msk.f32.vlgmr.msra.gmra.mrb[2].mxu0 %vm73_vm1, %v54_v15  ;;  %437 = vmatmul.mubr.msk.f32.vlgmr.msra.gmra.mrb[2].mxu1 %vm73_vm1, %v55_v16 }
 0x10f   :  { %v145_v17 = vpop.f32.mrb[0].mxu0  ;;  %v218_v18 = vpop.f32.mrb[0].mxu1 }
 0x110   :  { %v423_v19 = vpop.f32.mrb[1].mxu0  ;;  %v428_v20 = vpop.f32.mrb[1].mxu1  ;;  %v225_v21 = vrot.slane %v145_v17, %v67_v4  ;;  %v229_v22 = vrot.slane %v218_v18, %v67_v4 }
 0x118   :  { %v302_v23 = vpop.f32.mrb[2].mxu0  ;;  %v378_v24 = vpop.f32.mrb[2].mxu1 }
 0x119   :  { %v303_v25 = vadd.f32 %v302_v23, %v225_v21  ;;  %v379_v26 = vadd.f32 %v378_v24, %v229_v22  ;;  %v433_v27 = vpop.f32.mrb[3].mxu0  ;;  %v438_v28 = vpop.f32.mrb[3].mxu1 }
 0x11b   :  { %383 = vst.msk [vmem:[#allocation8] sm:$0xff] %vm382_vm2, %v303_v25  ;;  %384 = vst.msk [vmem:[#allocation8 + $0x8] sm:$0xff] %vm382_vm2, %v379_v26 }
 0x11c   :  { %524 = shalt.err (!%p521_p0)
}
 0x11d   :  { %s525_s27 = scalar_lea.hbm %s641_s3, 256 }
 0x11e   :  { %p526_p1 = scmp.ne.s32.totalorder %s641_s3, %s525_s27  ;;  %p529_p2 = scmp.lt.u32.totalorder %s525_s27, %s641_s3 }
 0x120   :  { %p531_p3 = pnand %p529_p2, %p526_p1 }
 0x122   :  { %534 = shalt.err (!%p531_p3)
}
 0x123   :  { %396 = dma.vmem_to_hbm [thread:$0]  %s391_s21, 256, %s641_s3, [#allocation4], %s542_s22, %s542_s22, %s543_s23  }
 0x124   :  { %539 = dma.done.wait [#allocation4], 256  }
 0x125   :  { %540 = vsyncadd [#allocation4], 4294967040 }
 0x126   :  { %400 = vsyncpa [#allocation3], 1 }
 0x127   :  { %401 = vsyncpa [#allocation6], 1 }
 0x128   :  { %402 = vsyncpa [#allocation4], 1 }

</bundles_post_ra>
